<compile_context>
chip_gen: v5e
topology: v5e:2x2
jax: 0.10.0
libtpu: 0.0.40
codegen_flags: <defaults>
</compile_context>

<pallas_src>
import jax
import jax.numpy as jnp
from jax.experimental import pallas as pl
from jax.experimental.pallas import tpu as pltpu
from functools import partial

_LANES = 128
_SUBLANES = 8
_MAX_BLOCK_ROWS = 2048  # (2048, 128) f32 block = 1 MiB; x2 inputs x2 buffers = 4 MiB


def _l1_sum_kernel(p_ref, t_ref, out_ref, acc_ref, *,
                   rows, block_rows, num_blocks, blocks_per_core, need_mask):
    """Accumulates sum(|p - t|) into a per-core partial; out_ref is (1,1,1)."""
    c = pl.program_id(0)          # core / parallel axis
    j = pl.program_id(1)          # streaming / reduction axis
    blk = c * blocks_per_core + j  # logical block index over the row dimension

    @pl.when(j == 0)
    def _():
        acc_ref[...] = jnp.zeros_like(acc_ref)

    @pl.when(blk < num_blocks)
    def _():
        diff = jnp.abs(p_ref[...].astype(jnp.float32) -
                       t_ref[...].astype(jnp.float32))
        if need_mask:
            # Zero out rows of the (possibly partial) last block that lie past
            # the real data. Padded lanes (wrapper pad) are zero in both inputs
            # and contribute nothing, so only row masking is needed here.
            row_ids = (jax.lax.broadcasted_iota(jnp.int32,
                                                (block_rows, _LANES), 0)
                       + blk * block_rows)
            diff = jnp.where(row_ids < rows, diff, 0.0)
        # VPU-only fold: regroup sublanes and add vregs; no per-step XLU reduce.
        acc_ref[...] += jnp.sum(
            diff.reshape(block_rows // _SUBLANES, _SUBLANES, _LANES), axis=0)

    @pl.when(j == pl.num_programs(1) - 1)
    def _():
        # Single cross-lane/sublane reduce per core, in the epilogue.
        out_ref[...] = jnp.sum(acc_ref[...]).reshape(1, 1, 1)


def l1_adjust_loss(pred, target, adjust):
    """Returns scalar |mean(|pred - target|) - adjust| (float32)."""
    assert pred.shape == target.shape
    n = pred.size
    flat_p = jnp.ravel(pred)          # keep native dtype; kernel casts per-tile
    flat_t = jnp.ravel(target)

    if n <= _MAX_BLOCK_ROWS * _LANES:
        # Single-block path: pad up to a multiple of 8*128 so the block folds
        # evenly into (.., 8, 128). Tiny inputs -> negligible copy.
        pad = (-n) % (_SUBLANES * _LANES)
    else:
        # Multi-block path: only lane alignment needed; partial last block is
        # masked inside the kernel (no full-array pad copy for big tensors).
        pad = (-n) % _LANES
    if pad:
        # TODO(synk): a sub-128 remainder still costs one pad copy; could be
        # removed with an Element-indexed tail block if it ever matters.
        flat_p = jnp.pad(flat_p, (0, pad))
        flat_t = jnp.pad(flat_t, (0, pad))

    rows = (n + pad) // _LANES
    p2 = flat_p.reshape(rows, _LANES)
    t2 = flat_t.reshape(rows, _LANES)

    block_rows = min(_MAX_BLOCK_ROWS, rows)
    num_blocks = pl.cdiv(rows, block_rows)
    num_cores = 2 if num_blocks >= 2 else 1       # v7x: use both TensorCores
    blocks_per_core = pl.cdiv(num_blocks, num_cores)
    need_mask = (rows % block_rows) != 0

    def in_map(c, j):
        blk = c * blocks_per_core + j
        # Clamp: blocks past the end re-read a valid block; the kernel skips
        # their contribution via pl.when(blk < num_blocks).
        return (jnp.minimum(blk, num_blocks - 1), 0)

    kernel = partial(_l1_sum_kernel,
                     rows=rows, block_rows=block_rows, num_blocks=num_blocks,
                     blocks_per_core=blocks_per_core, need_mask=need_mask)

    elem_bytes = jnp.dtype(pred.dtype).itemsize
    partials = pl.pallas_call(
        kernel,
        out_shape=jax.ShapeDtypeStruct((num_cores, 1, 1), jnp.float32),
        grid=(num_cores, blocks_per_core),
        in_specs=[
            pl.BlockSpec((block_rows, _LANES), in_map),
            pl.BlockSpec((block_rows, _LANES), in_map),
        ],
        out_specs=pl.BlockSpec((1, 1, 1), lambda c, j: (c, 0, 0)),
        scratch_shapes=[pltpu.VMEM((_SUBLANES, _LANES), jnp.float32)],
        compiler_params=pltpu.CompilerParams(
            dimension_semantics=("parallel", "arbitrary")),
        cost_estimate=pl.CostEstimate(
            flops=3 * n,
            transcendentals=0,
            bytes_accessed=2 * n * elem_bytes + 4 * num_cores),
    )(p2, t2)

    # Trivial finish (scalar over <=2 partials): mean, subtract adjust, abs.
    adjust_f32 = jnp.asarray(adjust, dtype=jnp.float32)
    return jnp.abs(jnp.sum(partials) * (1.0 / float(n)) - adjust_f32)


def _reference(pred, target, adjust):
    return jnp.abs(jnp.mean(jnp.abs(pred.astype(jnp.float32) -
                                    target.astype(jnp.float32)))
                   - jnp.asarray(adjust, jnp.float32))


if __name__ == "__main__":
    key = jax.random.PRNGKey(0)

    # Primary check: small NCHW pair (single-block, single-core path).
    k1, k2, k3, k4 = jax.random.split(key, 4)
    pred = jax.random.normal(k1, (2, 4, 16, 16), dtype=jnp.float32)
    target = jax.random.normal(k2, (2, 4, 16, 16), dtype=jnp.float32)
    adjust = 0.1
    out = jax.block_until_ready(l1_adjust_loss(pred, target, adjust))
    ref = _reference(pred, target, adjust)
    assert jnp.allclose(out, ref, atol=1e-6, rtol=1e-5), (out, ref)

    # Secondary check: exercises multi-block streaming, dual-core parallel
    # split, partial-block masking and the clamped/skipped overflow block.
    pred2 = jax.random.normal(k3, (5, 4, 205, 128), dtype=jnp.float32)
    target2 = jax.random.normal(k4, (5, 4, 205, 128), dtype=jnp.float32)
    adjust2 = 0.25
    out2 = jax.block_until_ready(l1_adjust_loss(pred2, target2, adjust2))
    ref2 = _reference(pred2, target2, adjust2)
    assert jnp.allclose(out2, ref2, atol=1e-6, rtol=1e-5), (out2, ref2)

    print("KERNEL_OK")
</pallas_src>

<mosaic_0001>
module attributes {stable_mosaic.version = 11 : i64} {
  func.func @_l1_sum_kernel(%arg0: i32, %arg1: i32, %arg2: memref<16x128xf32, #tpu.memory_space<vmem>>, %arg3: memref<16x128xf32, #tpu.memory_space<vmem>>, %arg4: memref<1x1x1xf32, #tpu.memory_space<vmem>>, %arg5: memref<8x128xf32, #tpu.memory_space<vmem>>) attributes {dimension_semantics = [#tpu.dimension_semantics<parallel>, #tpu.dimension_semantics<arbitrary>], iteration_bounds = array<i64: 1, 1>, scalar_prefetch = 0 : i64, scratch_operands = 1 : i64, tpu.core_type = #tpu.core_type<tc>, window_params = [{transform_indices = @transform_0, window_bounds = array<i64: 16, 128>}, {transform_indices = @transform_1, window_bounds = array<i64: 16, 128>}, {transform_indices = @transform_2, window_bounds = array<i64: 1, 1, 1>}]} {
    %c1_i32 = arith.constant 1 : i32
    %0 = arith.muli %arg0, %c1_i32 : i32
    %1 = arith.addi %0, %arg1 : i32
    %c0_i32 = arith.constant 0 : i32
    %2 = arith.cmpi eq, %arg1, %c0_i32 : i32
    %3 = arith.extui %2 : i1 to i32
    %c0_i32_0 = arith.constant 0 : i32
    %4 = arith.cmpi ne, %3, %c0_i32_0 : i32
    scf.if %4 {
      %cst = arith.constant 0.000000e+00 : f32
      %11 = vector.broadcast %cst : f32 to vector<8x128xf32>
      %c0 = arith.constant 0 : index
      %c0_5 = arith.constant 0 : index
      %12 = vector.load %arg5[%c0, %c0_5] : memref<8x128xf32, #tpu.memory_space<vmem>>, vector<8x128xf32>
      tpu.vector_store %arg5[%c0, %c0_5], %11 {strides = array<i32>} : memref<8x128xf32, #tpu.memory_space<vmem>>, vector<8x128xf32>,
    } else {
    }
    %c1_i32_1 = arith.constant 1 : i32
    %5 = arith.cmpi slt, %1, %c1_i32_1 : i32
    %6 = arith.extui %5 : i1 to i32
    %c0_i32_2 = arith.constant 0 : i32
    %7 = arith.cmpi ne, %6, %c0_i32_2 : i32
    scf.if %7 {
      %c0 = arith.constant 0 : index
      %c0_5 = arith.constant 0 : index
      %11 = vector.load %arg2[%c0, %c0_5] : memref<16x128xf32, #tpu.memory_space<vmem>>, vector<16x128xf32>
      %c0_6 = arith.constant 0 : index
      %c0_7 = arith.constant 0 : index
      %12 = vector.load %arg3[%c0_6, %c0_7] : memref<16x128xf32, #tpu.memory_space<vmem>>, vector<16x128xf32>
      %13 = arith.subf %11, %12 : vector<16x128xf32>
      %14 = math.absf %13 : vector<16x128xf32>
      %c0_8 = arith.constant 0 : index
      %c0_9 = arith.constant 0 : index
      %15 = vector.load %arg5[%c0_8, %c0_9] : memref<8x128xf32, #tpu.memory_space<vmem>>, vector<8x128xf32>
      %16 = vector.shape_cast %14 : vector<16x128xf32> to vector<2x8x128xf32>
      %cst = arith.constant dense<0.000000e+00> : vector<8x128xf32>
      %17 = vector.multi_reduction <add>, %16, %cst [0] : vector<2x8x128xf32> to vector<8x128xf32>
      %18 = arith.addf %15, %17 : vector<8x128xf32>
      %c0_10 = arith.constant 0 : index
      %c0_11 = arith.constant 0 : index
      %19 = vector.load %arg5[%c0_10, %c0_11] : memref<8x128xf32, #tpu.memory_space<vmem>>, vector<8x128xf32>
      tpu.vector_store %arg5[%c0_10, %c0_11], %18 {strides = array<i32>} : memref<8x128xf32, #tpu.memory_space<vmem>>, vector<8x128xf32>,
    } else {
    }
    %c0_i32_3 = arith.constant 0 : i32
    %8 = arith.cmpi eq, %arg1, %c0_i32_3 : i32
    %9 = arith.extui %8 : i1 to i32
    %c0_i32_4 = arith.constant 0 : i32
    %10 = arith.cmpi ne, %9, %c0_i32_4 : i32
    scf.if %10 {
      %c0 = arith.constant 0 : index
      %c0_5 = arith.constant 0 : index
      %11 = vector.load %arg5[%c0, %c0_5] : memref<8x128xf32, #tpu.memory_space<vmem>>, vector<8x128xf32>
      %12 = vector.shape_cast %11 : vector<8x128xf32> to vector<1x8x128xf32>
      %cst = arith.constant dense<0.000000e+00> : vector<1xf32>
      %13 = vector.multi_reduction <add>, %12, %cst [1, 2] : vector<1x8x128xf32> to vector<1xf32>
      %14 = vector.shape_cast %13 : vector<1xf32> to vector<1x1x1xf32>
      %15 = vector.extract %14[0, 0, 0] : f32 from vector<1x1x1xf32>
      %16 = vector.broadcast %15 : f32 to vector<1x1x1xf32>
      %c0_6 = arith.constant 0 : index
      %c0_7 = arith.constant 0 : index
      %c0_8 = arith.constant 0 : index
      %17 = vector.load %arg4[%c0_6, %c0_7, %c0_8] : memref<1x1x1xf32, #tpu.memory_space<vmem>>, vector<1x1x1xf32>
      tpu.vector_store %arg4[%c0_6, %c0_7, %c0_8], %16 {strides = array<i32>} : memref<1x1x1xf32, #tpu.memory_space<vmem>>, vector<1x1x1xf32>,
    } else {
    }
    return
  }
  func.func @transform_0(%arg0: i32, %arg1: i32) -> (i32, i32) {
    %c1_i32 = arith.constant 1 : i32
    %0 = arith.muli %arg0, %c1_i32 : i32
    %1 = arith.addi %0, %arg1 : i32
    %c0_i32 = arith.constant 0 : i32
    %2 = arith.minsi %1, %c0_i32 : i32
    %c0_i32_0 = arith.constant 0 : i32
    %c0_i32_1 = arith.constant 0 : i32
    return %2, %c0_i32_0 : i32, i32
  }
  func.func @transform_1(%arg0: i32, %arg1: i32) -> (i32, i32) {
    %c1_i32 = arith.constant 1 : i32
    %0 = arith.muli %arg0, %c1_i32 : i32
    %1 = arith.addi %0, %arg1 : i32
    %c0_i32 = arith.constant 0 : i32
    %2 = arith.minsi %1, %c0_i32 : i32
    %c0_i32_0 = arith.constant 0 : i32
    %c0_i32_1 = arith.constant 0 : i32
    return %2, %c0_i32_0 : i32, i32
  }
  func.func @transform_2(%arg0: i32, %arg1: i32) -> (i32, i32, i32) {
    %c0_i32 = arith.constant 0 : i32
    %c0_i32_0 = arith.constant 0 : i32
    %c0_i32_1 = arith.constant 0 : i32
    return %arg0, %c0_i32, %c0_i32_0 : i32, i32, i32
  }
}

</mosaic_0001>

<bundles_post_ra>
// kernel: tpu_custom_call.1
= control target key start
LH: loop header
LB: loop body
LE: loop exit
PB: predicated region body
PF: predicated region fallthrough
CT: control target
= control target key end

     0   :  { %7 = vsyncpa [#allocation4], 0  ;;  %s238_s0 = inlined_call_operand.hbm [shape: f32[16,128], index: 0, kind: input, shape index: {}]   ;;  %s239_s1 = inlined_call_operand.hbm [shape: f32[16,128], index: 1, kind: input, shape index: {}]   ;;  %s240_s2 = inlined_call_operand.hbm [shape: f32[1,1,1], index: 2, kind: output, shape index: {}]  }
   0x1   :  { %8 = vsyncpa [#allocation7], 0 }
   0x2   :  { %9 = vsyncpa [#allocation5], 0  ;;  %s20_s11 = sshll.u32 %s238_s0, 4  ;;  %s209_s12 = smov [#allocation3]   ;;  %s21_s11 = int_to_ptr.hbm [resolvable:$true] %s20_s11 }
   0x3   :  { %s22_s13 = sshll.u32 %s209_s12, 4  ;;  %s39_s16 = sshll.u32 %s239_s1, 4  ;;  %s23_s13 = int_to_ptr.vmem [resolvable:$true] %s22_s13  ;;  %s40_s16 = int_to_ptr.hbm [resolvable:$true] %s39_s16 }
   0x4   :  { %s210_s17 = smov 128   ;;  %s211_s18 = smov 8  }
   0x5   :  { %28 = dma.hbm_to_vmem [thread:$0]  %s21_s11, 256, %s23_s13, [#allocation4], %s210_s17, %s210_s17, %s211_s18  }
   0x6   :  { %s212_s19 = smov [#allocation6]  }
   0x7   :  { %s41_s20 = sshll.u32 %s212_s19, 4  ;;  %s42_s20 = int_to_ptr.vmem [resolvable:$true] %s41_s20 }
   0x8   :  { %47 = dma.hbm_to_vmem [thread:$0]  %s40_s16, 256, %s42_s20, [#allocation7], %s210_s17, %s210_s17, %s211_s18  }
   0x9   :  { %203 = dma.done.wait [#allocation4], 256  }
   0xa   :  { %204 = vsyncadd [#allocation4], 4294967040 }
   0xb   :  { %205 = dma.done.wait [#allocation7], 256  }
   0xc   :  { %206 = vsyncadd [#allocation7], 4294967040  ;;  %v74_v0 = vld [vmem:[#allocation3] sm:$0xff]  ;;  %v75_v1 = vld [vmem:[#allocation3 + $0x8] sm:$0xff]  ;;  %s213_s0 = smov [#allocation8]   ;;  %s109_s23 = sshll.u32 %s240_s2, 4  ;;  %s110_s23 = int_to_ptr.hbm [resolvable:$true] %s109_s23 }
   0xd   :  { %v76_v2 = vld [vmem:[#allocation6] sm:$0xff]  ;;  %v77_v3 = vld [vmem:[#allocation6 + $0x8] sm:$0xff]  ;;  %s107_s1 = sshll.u32 %s213_s0, 4  ;;  %vm100_vm0 = vcmask 0   ;;  %s108_s1 = int_to_ptr.vmem [resolvable:$true] %s107_s1 }
   0xe   :  { %v78_v4 = vsub.f32 %v74_v0, %v76_v2  ;;  %v79_v5 = vsub.f32 %v75_v1, %v77_v3 }
  0x10   :  { %v80_v6 = vand.u32 2147483647, %v78_v4  ;;  %v81_v7 = vand.u32 2147483647, %v79_v5 }
  0x12   :  { %v83_v8 = vadd.f32 %v81_v7, %v80_v6 }
  0x14   :  { %90 = vadd.xlane.f32.xlu0 %v83_v8 }
  0x87   :  { %v91_v9 = vpop.xlane.xlu0 %90 }
  0x88   :  { %v92_v10 = vrot.slane %v91_v9, 4 }
  0x8a   :  { %v93_v11 = vadd.f32 %v92_v10, %v91_v9 }
  0x8c   :  { %v94_v12 = vrot.slane %v93_v11, 2 }
  0x8e   :  { %v95_v13 = vadd.f32 %v94_v12, %v93_v11 }
  0x90   :  { %v96_v14 = vrot.slane %v95_v13, 1 }
  0x92   :  { %v97_v15 = vadd.f32 %v96_v14, %v95_v13 }
  0x94   :  { %124 = vpush %v97_v15 }
  0xc5   :  { %s125_s24 = spop %124 }
  0xc6   :  { %v99_v16 = vstv %s125_s24 }
  0xc7   :  { %101 = vst.msk [vmem:[#allocation8] sm:$0x1] %vm100_vm0, %v99_v16 }
  0xc8   :  { %112 = dma.vmem_to_hbm [thread:$0]  %s108_s1, 16, %s110_s23, [#allocation5]  }
  0xc9   :  { %207 = dma.done.wait [#allocation5], 16  }
  0xca   :  { %208 = vsyncadd [#allocation5], 4294967280 }
  0xcb   :  { %117 = vsyncpa [#allocation4], 1 }
  0xcc   :  { %118 = vsyncpa [#allocation7], 1 }
  0xcd   :  { %119 = vsyncpa [#allocation5], 1 }

</bundles_post_ra>
